<compile_context>
chip_gen: v7x
topology: tpu7x:2x2x1
jax: 0.10.0
libtpu: 0.0.40
codegen_flags: <defaults>
</compile_context>

<pallas_src>
import functools
import math

import jax
import jax.numpy as jnp
from jax.experimental import pallas as pl
from jax.experimental.pallas import tpu as pltpu


LN_EPS = 1e-5
ROW_ALIGN = 16     # bf16 sublane packing -> keep row tile sizes/offsets 16-aligned
SUB_R = 256        # in-kernel compute strip (bounds vreg / VMEM-spill pressure)


def _cdiv(a, b):
    return -(-a // b)


def _round_up(n, m):
    return _cdiv(n, m) * m


def _choose_tiling(R, max_tile_r=2048, min_steps=8):
    """Pick (tile_r, Rpad, sub_r).

    Big DMA tiles (up to max_tile_r rows) for HBM efficiency, but keep at
    least `min_steps` grid steps when R is large enough so both v7x
    TensorCores get work and the BlockSpec pipeline has several steps per
    core to overlap DMA with compute.  Row over-padding is bounded by
    ~ROW_ALIGN*steps rows (tiles track cdiv(R, steps), only 16-aligned).
    """
    steps_cap = max(1, R // SUB_R)  # never shrink tiles below ~SUB_R rows just for steps
    n_steps = max(_cdiv(R, max_tile_r), min(min_steps, steps_cap))
    tile_r = min(max_tile_r, _round_up(_cdiv(R, n_steps), ROW_ALIGN))
    rpad = _round_up(R, tile_r)
    # Evenly sized in-kernel strips (<= ~SUB_R rows each, multiple of 16).
    n_sub = _cdiv(tile_r, SUB_R)
    sub_r = _round_up(_cdiv(tile_r, n_sub), ROW_ALIGN)
    return tile_r, rpad, sub_r


# ----------------------------------------------------------------------------
# Pallas kernel: fused spatial-MLP + residual + LayerNorm (96 real lanes)
# ----------------------------------------------------------------------------
def _spe_kernel(x_ref, c_ref, w1_ref, b1_ref, w2_ref, b2_ref,
                gamma_ref, beta_ref, o_ref, *, sub_r):
    tile_r = x_ref.shape[0]
    n_sub = _cdiv(tile_r, sub_r)

    def strip(r0):
        rows = pl.ds(r0, sub_r)
        # spatial_mlp: Linear -> ReLU -> Linear; bf16 MXU operands, f32 accum.
        c = c_ref[rows, :]                                          # (sub_r, D) bf16
        h = jnp.dot(c, w1_ref[...],
                    preferred_element_type=jnp.float32) + b1_ref[...]
        h = jnp.maximum(h, 0.0)
        sp = jnp.dot(h.astype(jnp.bfloat16), w2_ref[...],
                     preferred_element_type=jnp.float32) + b2_ref[...]
        # residual + LayerNorm, all in f32.  All 96 lanes are real features,
        # so no masking is needed.
        y = x_ref[rows, :] + sp                                     # (sub_r, D) f32
        mean = jnp.mean(y, axis=-1, keepdims=True)
        d = y - mean
        var = jnp.mean(d * d, axis=-1, keepdims=True)
        y_hat = d * jax.lax.rsqrt(var + LN_EPS)
        o_ref[rows, :] = (y_hat * gamma_ref[...] + beta_ref[...]).astype(o_ref.dtype)

    if n_sub == 1:
        strip(0)
    else:
        # Strip-mine the per-row compute so live values stay ~sub_r rows even
        # when the DMA tile is 2048 rows (bounds spill stores on v5e/v6e's
        # single vst slot).  Last strip start is clamped, so uneven tiles just
        # recompute a handful of overlapping rows (idempotent stores).
        def body(i, carry):
            r0 = jnp.minimum(i * sub_r, tile_r - sub_r)
            strip(pl.multiple_of(r0, ROW_ALIGN))
            return carry
        jax.lax.fori_loop(0, n_sub, body, 0)


def spatial_pe_forward(x, combined, w1, b1, w2, b2, gamma, beta,
                       *, max_tile_r=2048, min_steps=8):
    """
    x:        (B, S, D) float32    residual stream
    combined: (B, S, D) bfloat16   [seq_enc | trans_emb | rot_emb] pre-concat
    w1, w2:   (D, D)    bfloat16   (in, out) oriented: y = x @ W + b
    b1, b2, gamma, beta: (1, D) float32
    returns:  (B, S, D) float32
    """
    B, S, D = x.shape
    R = B * S
    tile_r, rpad, sub_r = _choose_tiling(R, max_tile_r=max_tile_r,
                                         min_steps=min_steps)

    x2 = x.reshape(R, D)
    c2 = combined.reshape(R, D)
    if rpad != R:
        x2 = jnp.pad(x2, ((0, rpad - R), (0, 0)))
        c2 = jnp.pad(c2, ((0, rpad - R), (0, 0)))

    grid = (rpad // tile_r,)
    row_spec = pl.BlockSpec((tile_r, D), lambda i: (i, 0))

    def full_spec(a, b):
        return pl.BlockSpec((a, b), lambda i: (0, 0))

    out = pl.pallas_call(
        functools.partial(_spe_kernel, sub_r=sub_r),
        out_shape=jax.ShapeDtypeStruct((rpad, D), x.dtype),
        grid_spec=pltpu.PrefetchScalarGridSpec(
            num_scalar_prefetch=0,
            grid=grid,
            in_specs=[
                row_spec,            # x (f32, 96 lanes)
                row_spec,            # combined encoding (bf16, 96 lanes)
                full_spec(D, D),     # w1 (bf16, resident)
                full_spec(1, D),     # b1
                full_spec(D, D),     # w2 (bf16, resident)
                full_spec(1, D),     # b2
                full_spec(1, D),     # gamma
                full_spec(1, D),     # beta
            ],
            out_specs=row_spec,
        ),
        compiler_params=pltpu.CompilerParams(
            dimension_semantics=("parallel",),
            vmem_limit_bytes=32 * 1024 * 1024,
        ),
    )(x2, c2, w1, b1, w2, b2, gamma, beta)

    if rpad != R:
        out = out[:R]
    return out.reshape(B, S, D)


# ----------------------------------------------------------------------------
# Module glue: parameter init + pe_seq table + embedding gathers (plain JAX)
# ----------------------------------------------------------------------------
def make_params(key, d_model, max_len=32, trans_bins=27000, rot_bins=8000):
    assert d_model % 3 == 0, "d_model must be divisible by 3 for this module"
    d3 = d_model // 3
    assert d3 % 2 == 0, "d_model // 3 must be even for the sin/cos interleave"

    # sinusoidal sequence positional encoding: (1, max_len, d3)
    position = jnp.arange(max_len, dtype=jnp.float32)[:, None]
    div_term = jnp.exp(jnp.arange(0, d3, 2, dtype=jnp.float32)
                       * (-math.log(10000.0) / d3))
    pe_seq = jnp.zeros((max_len, d3), dtype=jnp.float32)
    pe_seq = pe_seq.at[:, 0::2].set(jnp.sin(position * div_term))
    pe_seq = pe_seq.at[:, 1::2].set(jnp.cos(position * div_term))
    pe_seq = pe_seq[None]

    k1, k2, k3, k4 = jax.random.split(key, 4)
    # nn.Embedding default init: N(0, 1)
    trans_table = jax.random.normal(k1, (trans_bins, d3), dtype=jnp.float32)
    rot_table = jax.random.normal(k2, (rot_bins, d3), dtype=jnp.float32)

    # spatial_mlp Linears: module overrides init with weight ~ N(0, 0.01),
    # bias = 0.  Stored (in, out)-oriented so y = x @ W + b.
    w1 = 0.01 * jax.random.normal(k3, (d_model, d_model), dtype=jnp.float32)
    b1 = jnp.zeros((1, d_model), dtype=jnp.float32)
    w2 = 0.01 * jax.random.normal(k4, (d_model, d_model), dtype=jnp.float32)
    b2 = jnp.zeros((1, d_model), dtype=jnp.float32)

    gamma = jnp.ones((1, d_model), dtype=jnp.float32)
    beta = jnp.zeros((1, d_model), dtype=jnp.float32)

    return dict(pe_seq=pe_seq, trans_table=trans_table, rot_table=rot_table,
                w1=w1, b1=b1, w2=w2, b2=b2, gamma=gamma, beta=beta,
                trans_bins=trans_bins, rot_bins=rot_bins)


def prepare_kernel_params(params):
    """One-time bf16 cast of the kernel-side tables/weights (outside the hot
    path), so the gather+concat directly emits a lane-dense bf16 stream and
    no per-call astype pass is needed."""
    return dict(
        pe_seq=params["pe_seq"].astype(jnp.bfloat16),
        trans_table=params["trans_table"].astype(jnp.bfloat16),
        rot_table=params["rot_table"].astype(jnp.bfloat16),
        w1=params["w1"].astype(jnp.bfloat16),
        b1=params["b1"],
        w2=params["w2"].astype(jnp.bfloat16),
        b2=params["b2"],
        gamma=params["gamma"],
        beta=params["beta"],
    )


def spatial_3d_positional_encoding(params, kparams, x, translations, rotations):
    """Forward pass equivalent to Spatial3DPositionalEncoding.forward with
    translations/rotations provided (dropout = identity, eval mode).  The
    clamp of indices matches the module's get_spatial_encodings."""
    B, S, D = x.shape
    d3 = D // 3

    seq_enc = jnp.broadcast_to(kparams["pe_seq"][:, :S, :], (B, S, d3))
    # TODO(synk): the embedding gathers are data-dependent lookups into
    # (27000 x d3)/(8000 x d3) HBM tables; they stay as one fused XLA
    # gather+concat (emitting the bf16 (B,S,D) stream directly) rather than an
    # in-kernel scalar-prefetch / manual-DMA gather.
    trans_emb = jnp.take(kparams["trans_table"],
                         jnp.clip(translations, 0, params["trans_bins"] - 1), axis=0)
    rot_emb = jnp.take(kparams["rot_table"],
                       jnp.clip(rotations, 0, params["rot_bins"] - 1), axis=0)
    combined = jnp.concatenate([seq_enc, trans_emb, rot_emb], axis=-1)  # (B,S,D) bf16

    return spatial_pe_forward(
        x, combined,
        kparams["w1"], kparams["b1"], kparams["w2"], kparams["b2"],
        kparams["gamma"], kparams["beta"])


# ----------------------------------------------------------------------------
# Pure-JAX references for correctness checking
# ----------------------------------------------------------------------------
def reference_forward(params, x, translations, rotations,
                      matmul_dtype=jnp.float32):
    B, S, D = x.shape
    d3 = D // 3
    seq_enc = jnp.broadcast_to(params["pe_seq"][:, :S, :], (B, S, d3))
    trans_emb = jnp.take(params["trans_table"],
                         jnp.clip(translations, 0, params["trans_bins"] - 1), axis=0)
    rot_emb = jnp.take(params["rot_table"],
                       jnp.clip(rotations, 0, params["rot_bins"] - 1), axis=0)
    combined = jnp.concatenate([seq_enc, trans_emb, rot_emb], axis=-1)

    c = combined.astype(matmul_dtype)
    w1 = params["w1"].astype(matmul_dtype)
    w2 = params["w2"].astype(matmul_dtype)
    h = jnp.maximum(jnp.dot(c, w1, preferred_element_type=jnp.float32)
                    + params["b1"][0], 0.0)
    spatial = jnp.dot(h.astype(matmul_dtype), w2,
                      preferred_element_type=jnp.float32) + params["b2"][0]

    y = x + spatial
    mean = jnp.mean(y, axis=-1, keepdims=True)
    var = jnp.mean((y - mean) ** 2, axis=-1, keepdims=True)
    y_hat = (y - mean) / jnp.sqrt(var + LN_EPS)
    return y_hat * params["gamma"][0] + params["beta"][0]


if __name__ == "__main__":
    key = jax.random.PRNGKey(0)
    k_param, k_x, k_t, k_r = jax.random.split(key, 4)

    batch, seq_len, d_model = 2, 8, 96  # d_model // 3 = 32
    params = make_params(k_param, d_model, max_len=32,
                         trans_bins=27000, rot_bins=8000)
    kparams = prepare_kernel_params(params)

    x = jax.random.normal(k_x, (batch, seq_len, d_model), dtype=jnp.float32)
    translations = jax.random.randint(k_t, (batch, seq_len), 0, 27000, dtype=jnp.int32)
    rotations = jax.random.randint(k_r, (batch, seq_len), 0, 8000, dtype=jnp.int32)

    fwd = jax.jit(spatial_3d_positional_encoding)
    out = jax.block_until_ready(fwd(params, kparams, x, translations, rotations))
    assert out.shape == (batch, seq_len, d_model)

    # Tight check against a reference that mirrors the bf16-operand / f32-accum
    # matmuls; loose check against the full-f32 reference (module semantics).
    ref_bf16 = reference_forward(params, x, translations, rotations,
                                 matmul_dtype=jnp.bfloat16)
    ref_f32 = reference_forward(params, x, translations, rotations,
                                matmul_dtype=jnp.float32)
    assert jnp.allclose(out, ref_bf16, atol=5e-4, rtol=5e-4), \
        f"bf16-ref max abs diff {jnp.max(jnp.abs(out - ref_bf16))}"
    assert jnp.allclose(out, ref_f32, atol=5e-3, rtol=5e-3), \
        f"f32-ref max abs diff {jnp.max(jnp.abs(out - ref_f32))}"

    print("KERNEL_OK")
</pallas_src>

<mosaic_0001>
module attributes {stable_mosaic.version = 11 : i64} {
  func.func @_spe_kernel(%arg0: i32, %arg1: memref<16x96xf32, #tpu.memory_space<vmem>>, %arg2: memref<16x96xbf16, #tpu.memory_space<vmem>>, %arg3: memref<96x96xbf16, #tpu.memory_space<vmem>>, %arg4: memref<1x96xf32, #tpu.memory_space<vmem>>, %arg5: memref<96x96xbf16, #tpu.memory_space<vmem>>, %arg6: memref<1x96xf32, #tpu.memory_space<vmem>>, %arg7: memref<1x96xf32, #tpu.memory_space<vmem>>, %arg8: memref<1x96xf32, #tpu.memory_space<vmem>>, %arg9: memref<16x96xf32, #tpu.memory_space<vmem>>) attributes {dimension_semantics = [#tpu.dimension_semantics<parallel>], iteration_bounds = array<i64: 1>, scalar_prefetch = 0 : i64, scratch_operands = 0 : i64, tpu.core_type = #tpu.core_type<tc>, window_params = [{transform_indices = @transform_0, window_bounds = array<i64: 16, 96>}, {transform_indices = @transform_1, window_bounds = array<i64: 16, 96>}, {pipeline_mode = #tpu.pipeline_mode<synchronous>, transform_indices = @transform_2, window_bounds = array<i64: 96, 96>}, {pipeline_mode = #tpu.pipeline_mode<synchronous>, transform_indices = @transform_3, window_bounds = array<i64: 1, 96>}, {pipeline_mode = #tpu.pipeline_mode<synchronous>, transform_indices = @transform_4, window_bounds = array<i64: 96, 96>}, {pipeline_mode = #tpu.pipeline_mode<synchronous>, transform_indices = @transform_5, window_bounds = array<i64: 1, 96>}, {pipeline_mode = #tpu.pipeline_mode<synchronous>, transform_indices = @transform_6, window_bounds = array<i64: 1, 96>}, {pipeline_mode = #tpu.pipeline_mode<synchronous>, transform_indices = @transform_7, window_bounds = array<i64: 1, 96>}, {transform_indices = @transform_8, window_bounds = array<i64: 16, 96>}]} {
    %c0 = arith.constant 0 : index
    %c0_0 = arith.constant 0 : index
    %0 = vector.load %arg2[%c0, %c0_0] : memref<16x96xbf16, #tpu.memory_space<vmem>>, vector<16x96xbf16>
    %c0_1 = arith.constant 0 : index
    %c0_2 = arith.constant 0 : index
    %1 = vector.load %arg3[%c0_1, %c0_2] : memref<96x96xbf16, #tpu.memory_space<vmem>>, vector<96x96xbf16>
    %cst = arith.constant dense<0.000000e+00> : vector<16x96xf32>
    %2 = tpu.matmul %0, %1, %cst {dimension_numbers = #tpu.dot_dimension_numbers<[1], [0], [0], [1], [0, 0, 1, 1], [], []>} : vector<16x96xbf16>, vector<96x96xbf16>, vector<16x96xf32> -> vector<16x96xf32>
    %c0_3 = arith.constant 0 : index
    %c0_4 = arith.constant 0 : index
    %3 = vector.load %arg4[%c0_3, %c0_4] : memref<1x96xf32, #tpu.memory_space<vmem>>, vector<1x96xf32>
    %4 = vector.broadcast %3 : vector<1x96xf32> to vector<16x96xf32>
    %5 = arith.addf %2, %4 : vector<16x96xf32>
    %cst_5 = arith.constant 0.000000e+00 : f32
    %6 = vector.broadcast %cst_5 : f32 to vector<16x96xf32>
    %7 = arith.maximumf %5, %6 : vector<16x96xf32>
    %8 = arith.truncf %7 : vector<16x96xf32> to vector<16x96xbf16>
    %c0_6 = arith.constant 0 : index
    %c0_7 = arith.constant 0 : index
    %9 = vector.load %arg5[%c0_6, %c0_7] : memref<96x96xbf16, #tpu.memory_space<vmem>>, vector<96x96xbf16>
    %cst_8 = arith.constant dense<0.000000e+00> : vector<16x96xf32>
    %10 = tpu.matmul %8, %9, %cst_8 {dimension_numbers = #tpu.dot_dimension_numbers<[1], [0], [0], [1], [0, 0, 1, 1], [], []>} : vector<16x96xbf16>, vector<96x96xbf16>, vector<16x96xf32> -> vector<16x96xf32>
    %c0_9 = arith.constant 0 : index
    %c0_10 = arith.constant 0 : index
    %11 = vector.load %arg6[%c0_9, %c0_10] : memref<1x96xf32, #tpu.memory_space<vmem>>, vector<1x96xf32>
    %12 = vector.broadcast %11 : vector<1x96xf32> to vector<16x96xf32>
    %13 = arith.addf %10, %12 : vector<16x96xf32>
    %c0_11 = arith.constant 0 : index
    %c0_12 = arith.constant 0 : index
    %14 = vector.load %arg1[%c0_11, %c0_12] : memref<16x96xf32, #tpu.memory_space<vmem>>, vector<16x96xf32>
    %15 = arith.addf %14, %13 : vector<16x96xf32>
    %cst_13 = arith.constant dense<0.000000e+00> : vector<16xf32>
    %16 = vector.multi_reduction <add>, %15, %cst_13 [1] : vector<16x96xf32> to vector<16xf32>
    %17 = vector.shape_cast %16 : vector<16xf32> to vector<16x1xf32>
    %cst_14 = arith.constant 9.600000e+01 : f32
    %18 = vector.broadcast %cst_14 : f32 to vector<16x1xf32>
    %19 = arith.divf %17, %18 : vector<16x1xf32>
    %20 = vector.broadcast %19 : vector<16x1xf32> to vector<16x96xf32>
    %21 = arith.subf %15, %20 : vector<16x96xf32>
    %22 = arith.mulf %21, %21 : vector<16x96xf32>
    %cst_15 = arith.constant dense<0.000000e+00> : vector<16xf32>
    %23 = vector.multi_reduction <add>, %22, %cst_15 [1] : vector<16x96xf32> to vector<16xf32>
    %24 = vector.shape_cast %23 : vector<16xf32> to vector<16x1xf32>
    %cst_16 = arith.constant 9.600000e+01 : f32
    %25 = vector.broadcast %cst_16 : f32 to vector<16x1xf32>
    %26 = arith.divf %24, %25 : vector<16x1xf32>
    %cst_17 = arith.constant 9.99999974E-6 : f32
    %27 = vector.broadcast %cst_17 : f32 to vector<16x1xf32>
    %28 = arith.addf %26, %27 : vector<16x1xf32>
    %29 = math.rsqrt %28 : vector<16x1xf32>
    %30 = vector.broadcast %29 : vector<16x1xf32> to vector<16x96xf32>
    %31 = arith.mulf %21, %30 : vector<16x96xf32>
    %c0_18 = arith.constant 0 : index
    %c0_19 = arith.constant 0 : index
    %32 = vector.load %arg7[%c0_18, %c0_19] : memref<1x96xf32, #tpu.memory_space<vmem>>, vector<1x96xf32>
    %33 = vector.broadcast %32 : vector<1x96xf32> to vector<16x96xf32>
    %34 = arith.mulf %31, %33 : vector<16x96xf32>
    %c0_20 = arith.constant 0 : index
    %c0_21 = arith.constant 0 : index
    %35 = vector.load %arg8[%c0_20, %c0_21] : memref<1x96xf32, #tpu.memory_space<vmem>>, vector<1x96xf32>
    %36 = vector.broadcast %35 : vector<1x96xf32> to vector<16x96xf32>
    %37 = arith.addf %34, %36 : vector<16x96xf32>
    %c0_22 = arith.constant 0 : index
    %c0_23 = arith.constant 0 : index
    %38 = vector.load %arg9[%c0_22, %c0_23] : memref<16x96xf32, #tpu.memory_space<vmem>>, vector<16x96xf32>
    tpu.vector_store %arg9[%c0_22, %c0_23], %37 {strides = array<i32>} : memref<16x96xf32, #tpu.memory_space<vmem>>, vector<16x96xf32>,
    return
  }
  func.func @transform_0(%arg0: i32) -> (i32, i32) {
    %c0_i32 = arith.constant 0 : i32
    %c0_i32_0 = arith.constant 0 : i32
    return %arg0, %c0_i32 : i32, i32
  }
  func.func @transform_1(%arg0: i32) -> (i32, i32) {
    %c0_i32 = arith.constant 0 : i32
    %c0_i32_0 = arith.constant 0 : i32
    return %arg0, %c0_i32 : i32, i32
  }
  func.func @transform_2(%arg0: i32) -> (i32, i32) {
    %c0_i32 = arith.constant 0 : i32
    %c0_i32_0 = arith.constant 0 : i32
    %c0_i32_1 = arith.constant 0 : i32
    return %c0_i32, %c0_i32_0 : i32, i32
  }
  func.func @transform_3(%arg0: i32) -> (i32, i32) {
    %c0_i32 = arith.constant 0 : i32
    %c0_i32_0 = arith.constant 0 : i32
    %c0_i32_1 = arith.constant 0 : i32
    return %c0_i32, %c0_i32_0 : i32, i32
  }
  func.func @transform_4(%arg0: i32) -> (i32, i32) {
    %c0_i32 = arith.constant 0 : i32
    %c0_i32_0 = arith.constant 0 : i32
    %c0_i32_1 = arith.constant 0 : i32
    return %c0_i32, %c0_i32_0 : i32, i32
  }
  func.func @transform_5(%arg0: i32) -> (i32, i32) {
    %c0_i32 = arith.constant 0 : i32
    %c0_i32_0 = arith.constant 0 : i32
    %c0_i32_1 = arith.constant 0 : i32
    return %c0_i32, %c0_i32_0 : i32, i32
  }
  func.func @transform_6(%arg0: i32) -> (i32, i32) {
    %c0_i32 = arith.constant 0 : i32
    %c0_i32_0 = arith.constant 0 : i32
    %c0_i32_1 = arith.constant 0 : i32
    return %c0_i32, %c0_i32_0 : i32, i32
  }
  func.func @transform_7(%arg0: i32) -> (i32, i32) {
    %c0_i32 = arith.constant 0 : i32
    %c0_i32_0 = arith.constant 0 : i32
    %c0_i32_1 = arith.constant 0 : i32
    return %c0_i32, %c0_i32_0 : i32, i32
  }
  func.func @transform_8(%arg0: i32) -> (i32, i32) {
    %c0_i32 = arith.constant 0 : i32
    %c0_i32_0 = arith.constant 0 : i32
    return %arg0, %c0_i32 : i32, i32
  }
}

</mosaic_0001>

<bundles_post_ra>
// kernel: spatial_3d_positional_encoding.1
= control target key start
LH: loop header
LB: loop body
LE: loop exit
PB: predicated region body
PF: predicated region fallthrough
CT: control target
= control target key end

     0   :  { %v418_v1 = vmov 0.0   ;;  %vm419_vm0 = vmmov 0   ;;  %s545_s0 = inlined_call_operand.vmem [shape: f32[16,96], index: 0, kind: input, shape index: {}]   ;;  %s546_s1 = inlined_call_operand.vmem [shape: bf16[16,96], index: 1, kind: input, shape index: {}]   ;;  %s547_s2 = inlined_call_operand.vmem [shape: bf16[96,96], index: 2, kind: input, shape index: {}]   ;;  %s548_s3 = inlined_call_operand.vmem [shape: f32[1,96], index: 3, kind: input, shape index: {}]   ;;  %s549_s4 = inlined_call_operand.vmem [shape: bf16[96,96], index: 4, kind: input, shape index: {}]   ;;  %s550_s5 = inlined_call_operand.vmem [shape: f32[1,96], index: 5, kind: input, shape index: {}]   ;;  %s551_s6 = inlined_call_operand.vmem [shape: f32[1,96], index: 6, kind: input, shape index: {}]   ;;  %s552_s7 = inlined_call_operand.vmem [shape: f32[1,96], index: 7, kind: input, shape index: {}]   ;;  %s553_s8 = inlined_call_operand.hbm [shape: f32[16,96], index: 8, kind: output, shape index: {}]  }
   0x1   :  { %v377_v0 = vld [vmem:[%s547_s2] sm:$0xff]   ;;  %340 = vmatprep.subr.bf16.mxu0 %v418_v1  ;;  %356 = vmatprep.subr.bf16.mxu1 %v418_v1  ;;  %v378_v2 = vld [vmem:[%s547_s2 + $0x8] sm:$0xff]   ;;  %v379_v3 = vld [vmem:[%s547_s2 + $0x10] sm:$0xff]  }
   0x2   :  { %341 = vmatpush3.bf16.msra.mxu0 %v377_v0  ;;  %352 = vmatprep.mubr.msk.bf16.mxu0 %vm419_vm0, %v418_v1  ;;  %v384_v4 = vld [vmem:[%s549_s4] sm:$0xff]   ;;  %v385_v5 = vld [vmem:[%s549_s4 + $0x8] sm:$0xff]   ;;  %v380_v6 = vld [vmem:[%s547_s2 + $0x18] sm:$0xff]  }
   0x3   :  { %342 = vmatprep.subr.bf16.mxu0 %v418_v1  ;;  %368 = vmatprep.mubr.msk.bf16.mxu1 %vm419_vm0, %v418_v1 }
   0x4   :  { %357 = vmatpush3.bf16.msra.mxu1 %v384_v4 }
   0x5   :  { %358 = vmatprep.subr.bf16.mxu1 %v418_v1 }
   0x6   :  { %343 = vmatpush3.bf16.msra.mxu0 %v378_v2 }
   0x7   :  { %344 = vmatprep.subr.bf16.mxu0 %v418_v1 }
   0xa   :  { %345 = vmatpush3.bf16.msra.mxu0 %v379_v3 }
   0xb   :  { %346 = vmatprep.subr.bf16.mxu0 %v418_v1 }
   0xc   :  { %13 = vsyncpa [#allocation3], 0  ;;  %359 = vmatpush3.bf16.msra.mxu1 %v385_v5  ;;  %v386_v7 = vld [vmem:[%s549_s4 + $0x10] sm:$0xff]   ;;  %v381_v8 = vld [vmem:[%s547_s2 + $0x20] sm:$0xff]   ;;  %vm93_vm1 = vcmask 785408   ;;  %s420_s15 = smov [#allocation2]  }
   0xd   :  { %360 = vmatprep.subr.bf16.mxu1 %v418_v1  ;;  %v387_v9 = vld [vmem:[%s549_s4 + $0x18] sm:$0xff]   ;;  %v382_v10 = vld [vmem:[%s547_s2 + $0x28] sm:$0xff]   ;;  %v383_v11 = vld [vmem:[%s546_s1] sm:$0xff]   ;;  %s296_s16 = sshll.u32 %s420_s15, 4  ;;  %s297_s16 = int_to_ptr.vmem [resolvable:$true] %s296_s16 }
   0xe   :  { %347 = vmatpush3.bf16.msra.mxu0 %v380_v6  ;;  %v388_v12 = vld [vmem:[%s549_s4 + $0x20] sm:$0xff]   ;;  %v389_v13 = vld [vmem:[%s549_s4 + $0x28] sm:$0xff]   ;;  %s394_s17 = scalar_lea.vmem %s297_s16, 256  ;;  %p399_p1 = scmp.lt.s32.totalorder %s297_s16, %s297_s16 }
   0xf   :  { %348 = vmatprep.subr.bf16.mxu0 %v418_v1  ;;  %v307_v14 = vld [vmem:[%s548_s3] ss:$0 sm:$0xff]  ;;  %v241_v30 = vld [vmem:[%s545_s0 + $0x8] sm:$0xff]  ;;  %p395_p0 = scmp.ne.s32.totalorder %s297_s16, %s394_s17  ;;  %p400_p2 = scmp.lt.s32.totalorder %s394_s17, %s394_s17 }
  0x10   :  { %361 = vmatpush3.bf16.msra.mxu1 %v386_v7  ;;  %v316_v24 = vld [vmem:[%s550_s5] ss:$0 sm:$0xff] }
  0x11   :  { %362 = vmatprep.subr.bf16.mxu1 %v418_v1  ;;  %v240_v26 = vld [vmem:[%s545_s0] sm:$0xff]  ;;  %p401_p3 = por %p400_p2, %p399_p1 }
  0x12   :  { %349 = vmatpush3.bf16.msra.mxu0 %v381_v8  ;;  %v324_v54 = vld [vmem:[%s551_s6] ss:$0 sm:$0xff] }
  0x13   :  { %350 = vmatprep.subr.bf16.mxu0 %v418_v1  ;;  %v325_v56 = vld [vmem:[%s552_s7] ss:$0 sm:$0xff]  ;;  %p402_p4 = pnand %p401_p3, %p395_p0 }
  0x14   :  { %363 = vmatpush3.bf16.msra.mxu1 %v387_v9 }
  0x15   :  { %364 = vmatprep.subr.bf16.mxu1 %v418_v1 }
  0x16   :  { %351 = vmatpush3.bf16.msra.mxu0 %v382_v10 }
  0x18   :  { %365 = vmatpush3.bf16.msra.mxu1 %v388_v12 }
  0x19   :  { %353 = vmatmul.mubr.msk.bf16.vlgmr.msra.gmra.mrb[0].mxu0 %vm93_vm1, %v383_v11  ;;  %366 = vmatprep.subr.bf16.mxu1 %v418_v1 }
  0x1c   :  { %367 = vmatpush3.bf16.msra.mxu1 %v389_v13 }
  0xec   :  { %v131_v15 = vpop.f32.mrb[0].mxu0 }
  0xed   :  { %v132_v16 = vadd.f32 %v307_v14, %v131_v15  ;;  %v354_v17 = vpop.f32.mrb[1].mxu0 }
  0xee   :  { %v134_v18 = vpop.f32.mrb[2].mxu0 }
  0xef   :  { %v135_v19 = vadd.f32 %v307_v14, %v134_v18  ;;  %v355_v20 = vpop.f32.mrb[3].mxu0  ;;  %v138_v21 = vmax.f32 %v132_v16, 0.0 }
  0xf1   :  { %v139_v22 = vmax.f32 %v135_v19, 0.0 }
  0xf3   :  { %v140_v23 = vpack.c.bf16 %v139_v22, %v138_v21 }
  0xf5   :  { %369 = vmatmul.mubr.msk.bf16.vlgmr.msra.gmra.mrb[0].mxu1 %vm93_vm1, %v140_v23 }
 0x1c8   :  { %v233_v25 = vpop.f32.mrb[0].mxu1 }
 0x1c9   :  { %v234_v27 = vadd.f32 %v316_v24, %v233_v25  ;;  %v370_v28 = vpop.f32.mrb[1].mxu1 }
 0x1ca   :  { %v236_v29 = vpop.f32.mrb[2].mxu1 }
 0x1cb   :  { %v237_v31 = vadd.f32 %v316_v24, %v236_v29  ;;  %v371_v32 = vpop.f32.mrb[3].mxu1  ;;  %v242_v33 = vadd.f32 %v240_v26, %v234_v27 }
 0x1cd   :  { %v244_v34 = vsel %vm93_vm1, %v242_v33, 0.0  ;;  %v243_v35 = vadd.f32 %v241_v30, %v237_v31 }
 0x1ce   :  { %245 = vadd.xlane.f32.xlu0 %v244_v34 }
 0x1cf   :  { %v247_v36 = vsel %vm93_vm1, %v243_v35, 0.0 }
 0x1d2   :  { %248 = vadd.xlane.f32.xlu0 %v247_v36 }
 0x25b   :  { %v246_v37 = vpop.xlane.xlu0 %245 }
 0x25c   :  { %v251_v38 = vmul.f32 0.010416667, %v246_v37 }
 0x25e   :  { %v253_v39 = vsub.f32 %v242_v33, %v251_v38 }
 0x25f   :  { %v249_v40 = vpop.xlane.xlu0 %248 }
 0x260   :  { %v252_v41 = vmul.f32 0.010416667, %v249_v40  ;;  %v255_v42 = vmul.f32 %v253_v39, %v253_v39 }
 0x262   :  { %v254_v43 = vsub.f32 %v243_v35, %v252_v41  ;;  %v257_v44 = vsel %vm93_vm1, %v255_v42, 0.0 }
 0x263   :  { %258 = vadd.xlane.f32.xlu1 %v257_v44 }
 0x264   :  { %v256_v45 = vmul.f32 %v254_v43, %v254_v43 }
 0x266   :  { %v260_v46 = vsel %vm93_vm1, %v256_v45, 0.0 }
 0x267   :  { %261 = vadd.xlane.f32.xlu1 %v260_v46 }
 0x2f0   :  { %v259_v47 = vpop.xlane.xlu1 %258 }
 0x2f1   :  { %v263_v48 = vmul.f32 0.010416667, %v259_v47 }
 0x2f3   :  { %v265_v49 = vadd.f32 1e-05, %v263_v48 }
 0x2f4   :  { %v262_v50 = vpop.xlane.xlu1 %261 }
 0x2f5   :  { %390 = vrsqrt.f32 %v265_v49  ;;  %v264_v51 = vmul.f32 0.010416667, %v262_v50 }
 0x2f7   :  { %v266_v52 = vadd.f32 1e-05, %v264_v51 }
 0x2f9   :  { %392 = vrsqrt.f32 %v266_v52 }
 0x2ff   :  { %v391_v53 = vpop.eup %390 }
 0x300   :  { %v269_v55 = vmul.f32 %v391_v53, %v253_v39 }
 0x302   :  { %v278_v57 = vmul.f32 %v324_v54, %v269_v55 }
 0x303   :  { %v393_v58 = vpop.eup %392 }
 0x304   :  { %v270_v59 = vmul.f32 %v393_v58, %v254_v43  ;;  %v287_v60 = vadd.f32 %v325_v56, %v278_v57 }
 0x306   :  { %v279_v61 = vmul.f32 %v324_v54, %v270_v59  ;;  %289 = vst.msk [vmem:[#allocation2] sm:$0xff] %vm93_vm1, %v287_v60 }
 0x308   :  { %v288_v62 = vadd.f32 %v325_v56, %v279_v61 }
 0x30a   :  { %290 = vst.msk [vmem:[#allocation2 + $0x8] sm:$0xff] %vm93_vm1, %v288_v62 }
 0x30b   :  { %405 = shalt.err (!%p402_p4)
}
 0x30c   :  { %s406_s18 = scalar_lea.hbm %s553_s8, 256 }
 0x30d   :  { %p407_p5 = scmp.ne.s32.totalorder %s553_s8, %s406_s18  ;;  %p410_p6 = scmp.lt.u32.totalorder %s406_s18, %s553_s8 }
 0x30f   :  { %p412_p7 = pnand %p410_p6, %p407_p5 }
 0x311   :  { %415 = shalt.err (!%p412_p7)
}
 0x312   :  { %s421_s23 = smov 128   ;;  %s422_s24 = smov 8  }
 0x313   :  { %302 = dma.vmem_to_hbm [thread:$0]  %s297_s16, 256, %s553_s8, [#allocation3], %s421_s23, %s421_s23, %s422_s24  }
 0x314   :  { %416 = dma.done.wait [#allocation3], 256  }
 0x315   :  { %417 = vsyncadd [#allocation3], 4294967040 }
 0x316   :  { %306 = vsyncpa [#allocation3], 1 }

</bundles_post_ra>
